<compile_context>
chip_gen: v5e
topology: v5e:2x2
jax: 0.10.0
libtpu: 0.0.40
codegen_flags: <defaults>
</compile_context>

<pallas_src>
import functools

import jax
import jax.numpy as jnp
import numpy as np
from jax.experimental import pallas as pl
from jax.experimental.pallas import tpu as pltpu


def _reconstruct_kernel(grid_ref, ewt_ref, out_ref, *, ph: int, width: int):
    # grid_ref: (TM, nw)      f32  rows of the CLS->patch attention grid
    # ewt_ref : (nw, W)       f32  one-hot column-expansion matrix (exact)
    # out_ref : (TM, ph*W)    f32  row-major-flattened upsampled rows
    #
    # Column expansion on the MXU: tmp[m, w] = grid[m, w // pw]  (lane-dense).
    tmp = jnp.dot(grid_ref[...], ewt_ref[...],
                  preferred_element_type=jnp.float32)        # (TM, W)
    tmp = tmp.astype(out_ref.dtype)
    # Row expansion as ph lane slice-stores of the flattened row-major layout:
    #   out[m, r*W + w] = tmp[m, w]   for r in [0, ph)
    # (keeps live vregs to ~one tmp tile instead of a ph*W-wide concat value).
    for r in range(ph):
        out_ref[:, r * width:(r + 1) * width] = tmp


def _is_dual_tensorcore_chip() -> bool:
    """True on dual-TensorCore chips (v7x); v5e/v6e are single-TC."""
    try:
        kind = jax.devices()[0].device_kind.lower()
    except Exception:
        return False
    return "7" in kind


def _pick_row_tile(total_rows: int, flat_w: int, *, dual_tc: bool,
                   itemsize: int = 4, max_tile_bytes: int = 8 << 20) -> int:
    """Pick the per-step row tile TM.

    Targets ~8 MiB of output per step (amortizes the ~0.35 us per-step
    pipeline overhead while staying well inside VMEM even double-buffered on
    v7x).  TM must divide total_rows and be a multiple of 8 (or the full
    dimension) per the (8, 128) block rule.  Only on dual-TC chips do we force
    >= 2 grid steps (prefer an even count) so both TensorCores get work;
    single-TC v5e/v6e take the biggest tile.
    """
    bytes_per_row = max(flat_w * itemsize, 1)
    cap = max(1, max_tile_bytes // bytes_per_row)
    if dual_tc and total_rows >= 16:
        cap = min(cap, total_rows // 2)
    cap = min(cap, total_rows)

    candidates = [t for t in range(cap, 0, -1)
                  if total_rows % t == 0 and (t % 8 == 0 or t == total_rows)]
    if not candidates:
        return total_rows            # single full-dim block (always legal)
    best = candidates[0]
    if dual_tc:
        # Prefer an even number of grid steps for megacore balance, as long as
        # it does not shrink the tile by more than 2x.
        for t in candidates:
            if (total_rows // t) % 2 == 0 and 2 * t >= best:
                return t
    return best


class AttentionMapReconstructor:
    """JAX/Pallas port of the PyTorch AttentionMapReconstructor."""

    def __init__(self, input_height: int, input_width: int,
                 patch_height: int, patch_width: int):
        self.input_height = input_height
        self.input_width = input_width
        self.patch_height = patch_height
        self.patch_width = patch_width
        self.num_patches_h = input_height // patch_height
        self.num_patches_w = input_width // patch_width

        # One-hot column expansion matrix E_w.T: (nw, W), E_w.T[j, w] = 1 iff
        # j == w // patch_width.  Stored in f32: loaded once (grid-invariant
        # index_map), only a few KiB, and avoids any per-step cast.
        w_idx = np.arange(input_width) // patch_width            # (W,)
        ew_t = np.zeros((self.num_patches_w, input_width), np.float32)
        ew_t[w_idx, np.arange(input_width)] = 1.0                # (nw, W)
        self.expand_w_t = jnp.asarray(ew_t)                      # f32

    def __call__(self, x: jnp.ndarray) -> jnp.ndarray:
        # x: (B, S, S) with S = 1 + nh*nw; CLS token at sequence index 0.
        cls_attention = x[:, 0, 1:]                              # (B, nh*nw)
        batch_size, seq_len = cls_attention.shape
        nh, nw = self.num_patches_h, self.num_patches_w
        if seq_len != nh * nw:
            raise ValueError(
                f"Expected seq_len {nh * nw}, but got {seq_len}.")

        H, W = self.input_height, self.input_width
        ph = self.patch_height
        flat_w = ph * W                      # lane width of the output tile
        total_rows = batch_size * nh         # independent grid rows

        # Free row-major reshape: row m = (b, i) of the attention grid.
        grid2d = cls_attention.reshape(total_rows, nw)           # (B*nh, nw)

        tm = _pick_row_tile(total_rows, flat_w,
                            dual_tc=_is_dual_tensorcore_chip())
        num_steps = total_rows // tm

        # Explicit VMEM budget: double-buffered in/out tiles + the one-hot
        # matrix + margin.  Kept <= 48 MiB so it is safe on v7x (64 MiB
        # physical per TC) while still raising the default scoped limit.
        needed = 2 * (tm * nw + tm * flat_w) * 4 + nw * W * 4 + (4 << 20)
        vmem_limit = int(min(max(needed, 32 << 20), 48 << 20))

        cost = pl.CostEstimate(
            flops=2 * total_rows * nw * W,
            transcendentals=0,
            bytes_accessed=(total_rows * nw + nw * W + total_rows * flat_w) * 4,
        )

        kernel = functools.partial(_reconstruct_kernel, ph=ph, width=W)
        out = pl.pallas_call(
            kernel,
            out_shape=jax.ShapeDtypeStruct((total_rows, flat_w), jnp.float32),
            grid_spec=pl.GridSpec(
                grid=(num_steps,),
                in_specs=[
                    pl.BlockSpec((tm, nw), lambda i: (i, 0)),
                    pl.BlockSpec((nw, W), lambda i: (0, 0)),
                ],
                out_specs=pl.BlockSpec((tm, flat_w), lambda i: (i, 0)),
            ),
            compiler_params=pltpu.CompilerParams(
                dimension_semantics=("parallel",),
                vmem_limit_bytes=vmem_limit),
            cost_estimate=cost,
        )(grid2d, self.expand_w_t)

        # Free row-major reshape:
        # (B*nh, ph*W) == (B, nh, ph, W) == (B, 1, nh*ph, W) == (B, 1, H, W)
        return out.reshape(batch_size, 1, H, W)


def _reference(x, input_height, input_width, patch_height, patch_width):
    """Pure-JAX reference reproducing the PyTorch loop semantics."""
    nh = input_height // patch_height
    nw = input_width // patch_width
    cls_attention = x[:, 0, 1:]
    b = cls_attention.shape[0]
    grid = cls_attention.reshape(b, nh, nw)
    up = jnp.repeat(jnp.repeat(grid, patch_height, axis=1), patch_width, axis=2)
    return up[:, None, :, :].astype(jnp.float32)


if __name__ == "__main__":
    # Small, module-consistent shapes: 16x16 image, 4x4 patches -> 4x4 = 16
    # patches, seq_len = 16 + 1 (CLS) = 17.
    B = 2
    input_height, input_width = 16, 16
    patch_height, patch_width = 4, 4
    S = 1 + (input_height // patch_height) * (input_width // patch_width)

    key = jax.random.PRNGKey(0)
    x = jax.random.uniform(key, (B, S, S), dtype=jnp.float32)
    # Row-normalize like softmaxed attention weights (not required, realistic).
    x = x / jnp.sum(x, axis=-1, keepdims=True)

    module = AttentionMapReconstructor(input_height, input_width,
                                       patch_height, patch_width)
    out = jax.block_until_ready(module(x))

    ref = _reference(x, input_height, input_width, patch_height, patch_width)
    assert out.shape == (B, 1, input_height, input_width)
    np.testing.assert_allclose(np.asarray(out), np.asarray(ref),
                               rtol=1e-6, atol=1e-6)

    print("KERNEL_OK")
</pallas_src>

<mosaic_0001>
module attributes {stable_mosaic.version = 11 : i64} {
  func.func @_reconstruct_kernel(%arg0: i32, %arg1: memref<8x4xf32, #tpu.memory_space<vmem>>, %arg2: memref<4x16xf32, #tpu.memory_space<vmem>>, %arg3: memref<8x64xf32, #tpu.memory_space<vmem>>) attributes {dimension_semantics = [#tpu.dimension_semantics<parallel>], iteration_bounds = array<i64: 1>, scalar_prefetch = 0 : i64, scratch_operands = 0 : i64, tpu.core_type = #tpu.core_type<tc>, window_params = [{transform_indices = @transform_0, window_bounds = array<i64: 8, 4>}, {pipeline_mode = #tpu.pipeline_mode<synchronous>, transform_indices = @transform_1, window_bounds = array<i64: 4, 16>}, {transform_indices = @transform_2, window_bounds = array<i64: 8, 64>}]} {
    %c0 = arith.constant 0 : index
    %c0_0 = arith.constant 0 : index
    %0 = vector.load %arg1[%c0, %c0_0] : memref<8x4xf32, #tpu.memory_space<vmem>>, vector<8x4xf32>
    %c0_1 = arith.constant 0 : index
    %c0_2 = arith.constant 0 : index
    %1 = vector.load %arg2[%c0_1, %c0_2] : memref<4x16xf32, #tpu.memory_space<vmem>>, vector<4x16xf32>
    %cst = arith.constant dense<0.000000e+00> : vector<8x16xf32>
    %2 = tpu.matmul %0, %1, %cst {dimension_numbers = #tpu.dot_dimension_numbers<[1], [0], [0], [1], [0, 0, 1, 1], [], []>} : vector<8x4xf32>, vector<4x16xf32>, vector<8x16xf32> -> vector<8x16xf32>
    %c0_3 = arith.constant 0 : index
    %c0_4 = arith.constant 0 : index
    %3 = vector.load %arg3[%c0_3, %c0_4] : memref<8x64xf32, #tpu.memory_space<vmem>>, vector<8x16xf32>
    tpu.vector_store %arg3[%c0_3, %c0_4], %2 {strides = array<i32>} : memref<8x64xf32, #tpu.memory_space<vmem>>, vector<8x16xf32>,
    %c0_5 = arith.constant 0 : index
    %c16 = arith.constant 16 : index
    %4 = vector.load %arg3[%c0_5, %c16] : memref<8x64xf32, #tpu.memory_space<vmem>>, vector<8x16xf32>
    tpu.vector_store %arg3[%c0_5, %c16], %2 {strides = array<i32>} : memref<8x64xf32, #tpu.memory_space<vmem>>, vector<8x16xf32>,
    %c0_6 = arith.constant 0 : index
    %c32 = arith.constant 32 : index
    %5 = vector.load %arg3[%c0_6, %c32] : memref<8x64xf32, #tpu.memory_space<vmem>>, vector<8x16xf32>
    tpu.vector_store %arg3[%c0_6, %c32], %2 {strides = array<i32>} : memref<8x64xf32, #tpu.memory_space<vmem>>, vector<8x16xf32>,
    %c0_7 = arith.constant 0 : index
    %c48 = arith.constant 48 : index
    %6 = vector.load %arg3[%c0_7, %c48] : memref<8x64xf32, #tpu.memory_space<vmem>>, vector<8x16xf32>
    tpu.vector_store %arg3[%c0_7, %c48], %2 {strides = array<i32>} : memref<8x64xf32, #tpu.memory_space<vmem>>, vector<8x16xf32>,
    return
  }
  func.func @transform_0(%arg0: i32) -> (i32, i32) {
    %c0_i32 = arith.constant 0 : i32
    %c0_i32_0 = arith.constant 0 : i32
    return %arg0, %c0_i32 : i32, i32
  }
  func.func @transform_1(%arg0: i32) -> (i32, i32) {
    %c0_i32 = arith.constant 0 : i32
    %c0_i32_0 = arith.constant 0 : i32
    %c0_i32_1 = arith.constant 0 : i32
    return %c0_i32, %c0_i32_0 : i32, i32
  }
  func.func @transform_2(%arg0: i32) -> (i32, i32) {
    %c0_i32 = arith.constant 0 : i32
    %c0_i32_0 = arith.constant 0 : i32
    return %arg0, %c0_i32 : i32, i32
  }
}

</mosaic_0001>

<bundles_post_ra>
// kernel: tpu_custom_call.1
= control target key start
LH: loop header
LB: loop body
LE: loop exit
PB: predicated region body
PF: predicated region fallthrough
CT: control target
= control target key end

     0   :  { %vm18_vm0 = vcmask 1043456   ;;  %vm14_vm1 = vcmask 31744   ;;  %s136_s0 = inlined_call_operand.vmem [shape: f32[8,4], index: 0, kind: input, shape index: {}]   ;;  %s137_s1 = inlined_call_operand.vmem [shape: f32[4,16], index: 1, kind: input, shape index: {}]   ;;  %s138_s2 = inlined_call_operand.hbm [shape: f32[8,64], index: 2, kind: output, shape index: {}]  }
   0x1   :  { %v13_v0 = vld [vmem:[%s137_s1] sm:$0xf] }
   0x2   :  { %v12_v1 = vld [vmem:[%s136_s0] sm:$0xff]  ;;  %76 = vmatpush.msk.msra.mxu0 %vm18_vm0, %v13_v0 }
   0x3   :  { %7 = vsyncpa [#allocation3], 0  ;;  %77 = vmatmul.msk.f32.vlgmr.msra.gmra.mxu0 %vm14_vm1, %v12_v1  ;;  %vm42_vm2 = vcmask 130048   ;;  %s108_s13 = smov 48   ;;  %s109_s14 = smov 16   ;;  %vm48_vm3 = vcmask 261248  }
   0x4   :  { %s110_s15 = smov 32   ;;  %s111_s1 = smov [#allocation2]   ;;  %vm53_vm4 = vcmask 392448   ;;  %vm58_vm5 = vcmask 523648  }
   0x5   :  { %s65_s16 = sshll.u32 %s111_s1, 4  ;;  %s67_s18 = sshll.u32 %s138_s2, 4  ;;  %s66_s16 = int_to_ptr.vmem [resolvable:$true] %s65_s16  ;;  %s68_s18 = int_to_ptr.hbm [resolvable:$true] %s67_s18 }
  0x80   :  { %v39_v2 = vpop.f32.mrf.mxu0 }
  0x81   :  { %43 = vst.msk [vmem:[#allocation2] sm:$0xff] %vm42_vm2, %v39_v2  ;;  %55 = vrot.lane.b32.xlu1 %v39_v2, %s108_s13  ;;  %45 = vrot.lane.b32.xlu0 %v39_v2, %s109_s14 }
  0x89   :  { %50 = vrot.lane.b32.xlu0 %v39_v2, %s110_s15 }
  0xf3   :  { %v46_v3 = vpop.permute.xlu0 %45  ;;  %v56_v5 = vpop.permute.xlu1 %55 }
  0xf4   :  { %49 = vst.msk [vmem:[#allocation2] sm:$0xff] %vm48_vm3, %v46_v3 }
  0xfb   :  { %v51_v4 = vpop.permute.xlu0 %50 }
  0xfc   :  { %54 = vst.msk [vmem:[#allocation2] sm:$0xff] %vm53_vm4, %v51_v4 }
  0xfd   :  { %59 = vst.msk [vmem:[#allocation2] sm:$0xff] %vm58_vm5, %v56_v5 }
  0xfe   :  { %70 = dma.vmem_to_hbm [thread:$0]  %s66_s16, 128, %s68_s18, [#allocation3]  }
  0xff   :  { %106 = dma.done.wait [#allocation3], 128  }
 0x100   :  { %107 = vsyncadd [#allocation3], 4294967168 }
 0x101   :  { %75 = vsyncpa [#allocation3], 1 }

</bundles_post_ra>
